<compile_context>
chip_gen: v6e
topology: v6e:2x2x1
jax: 0.10.0
libtpu: 0.0.40
codegen_flags: <defaults>
</compile_context>

<pallas_src>
import jax
import jax.numpy as jnp
from jax import lax
from jax.experimental import pallas as pl
from jax.experimental.pallas import tpu as pltpu

EPS = 1e-7


def bbox_loss_kernel(pred_dist_ref, pred_bboxes_ref, anchors_ref,
                     target_bboxes_ref, weight_ref,
                     iou_sum_ref, dfl_sum_ref):
    R = pred_dist_ref.shape[2]

    b = pl.program_id(0)
    j = pl.program_id(1)

    @pl.when(jnp.logical_and(b == 0, j == 0))
    def _init():
        iou_sum_ref[0, 0] = 0.0
        dfl_sum_ref[0, 0] = 0.0

    w = weight_ref[0]            # (1, TA)  pre-reduced target_scores.sum(-1) * fg_mask
    pb = pred_bboxes_ref[0]      # (4, TA)
    tb = target_bboxes_ref[0]    # (4, TA)
    an = anchors_ref[...]        # (2, TA)

    b1x1, b1y1, b1x2, b1y2 = pb[0:1], pb[1:2], pb[2:3], pb[3:4]
    b2x1, b2y1, b2x2, b2y2 = tb[0:1], tb[1:2], tb[2:3], tb[3:4]

    # ---- plain IoU (xywh=False path of bbox_iou) ----
    inter = (jnp.maximum(jnp.minimum(b1x2, b2x2) - jnp.maximum(b1x1, b2x1), 0.0) *
             jnp.maximum(jnp.minimum(b1y2, b2y2) - jnp.maximum(b1y1, b2y1), 0.0))
    union = ((b1x2 - b1x1) * (b1y2 - b1y1) +
             (b2x2 - b2x1) * (b2y2 - b2y1) - inter + EPS)
    inv_u = pl.reciprocal(union, approx=True)      # EUP slot
    inv_u = inv_u * (2.0 - union * inv_u)          # one Newton step -> ~f32-exact
    iou = inter * inv_u                            # (1, TA)
    iou_sum_ref[0, 0] += jnp.sum((1.0 - iou) * w)

    # ---- DFL loss ----
    ax, ay = an[0:1], an[1:2]
    hi = float(R - 1) - 0.01
    # bbox2dist targets (l, t, r, b) — same order as the 4 side-blocks of pred_dist
    side_targets = (ax - b2x1, ay - b2y1, b2x2 - ax, b2y2 - ay)

    idx = lax.broadcasted_iota(jnp.int32, pred_dist_ref.shape[2:], 0)   # (R, TA)
    dfl = jnp.zeros(w.shape, jnp.float32)                               # (1, TA)
    for s in range(4):
        t = jnp.clip(side_targets[s], 0.0, hi)        # (1, TA)
        tl = t.astype(jnp.int32)                      # floor (t >= 0)
        wl = tl.astype(jnp.float32) + 1.0 - t
        wr = 1.0 - wl

        # per-side load: sublane-aligned slice of the bf16 ref, upcast to f32
        logits = pred_dist_ref[0, s].astype(jnp.float32)                # (R, TA)
        m = jnp.max(logits, axis=0, keepdims=True)
        lse = jnp.log(jnp.sum(jnp.exp(logits - m), axis=0, keepdims=True)) + m
        p_tl = jnp.sum(jnp.where(idx == tl, logits, 0.0), axis=0, keepdims=True)
        p_tr = jnp.sum(jnp.where(idx == tl + 1, logits, 0.0), axis=0, keepdims=True)
        dfl = dfl + (lse - p_tl) * wl + (lse - p_tr) * wr

    dfl_sum_ref[0, 0] += jnp.sum(dfl * (0.25 * w))    # mean over 4 sides folded in


def bbox_loss(pred_dist, pred_bboxes, anchor_points, target_bboxes,
              target_scores, target_scores_sum, fg_mask,
              *, tile_a=512, dist_dtype=jnp.bfloat16):
    """Pallas wrapper. Returns (loss_iou, loss_dfl) scalars."""
    B, A, four_r = pred_dist.shape
    R = four_r // 4
    f32 = jnp.float32

    # Anchor tile on the lane axis: multiple of 128, no bigger than needed.
    # (For v7x's smaller VMEM pick tile_a<=1024; on v6e up to 2048-4096 is fine.)
    tile_a = max(128, min(int(tile_a), 128 * pl.cdiv(A, 128)))
    n_a = pl.cdiv(A, tile_a)
    a_pad = n_a * tile_a
    pad = a_pad - A

    def pad_last(x):
        return jnp.pad(x, [(0, 0)] * (x.ndim - 1) + [(0, pad)])

    # Pre-reduce weight in the wrapper; padded anchors get weight 0.
    weight = target_scores.astype(f32).sum(-1) * fg_mask.astype(f32)      # [B, A]
    weight = pad_last(weight)[:, None, :]                                 # [B, 1, A_pad]

    pd = pred_dist.astype(dist_dtype).reshape(B, A, 4, R).transpose(0, 2, 3, 1)
    pd = pad_last(pd)                                                     # [B, 4, R, A_pad]
    pb = pad_last(pred_bboxes.astype(f32).transpose(0, 2, 1))             # [B, 4, A_pad]
    tb = pad_last(target_bboxes.astype(f32).transpose(0, 2, 1))           # [B, 4, A_pad]
    an = pad_last(anchor_points.astype(f32).T)                            # [2, A_pad]

    smem = pltpu.MemorySpace.SMEM
    cost = pl.CostEstimate(
        flops=int(B * a_pad * (40 + 4 * (3 * R + 12))),
        transcendentals=int(B * a_pad * (4 * (R + 1) + 1)),
        bytes_accessed=int(pd.size * pd.dtype.itemsize +
                           4 * (pb.size + tb.size + an.size + weight.size)))

    iou_sum, dfl_sum = pl.pallas_call(
        bbox_loss_kernel,
        out_shape=(jax.ShapeDtypeStruct((1, 1), f32),
                   jax.ShapeDtypeStruct((1, 1), f32)),
        grid_spec=pltpu.PrefetchScalarGridSpec(
            num_scalar_prefetch=0,
            grid=(B, n_a),
            in_specs=[
                pl.BlockSpec((1, 4, R, tile_a), lambda b, j: (b, 0, 0, j)),
                pl.BlockSpec((1, 4, tile_a), lambda b, j: (b, 0, j)),
                pl.BlockSpec((2, tile_a), lambda b, j: (0, j)),
                pl.BlockSpec((1, 4, tile_a), lambda b, j: (b, 0, j)),
                pl.BlockSpec((1, 1, tile_a), lambda b, j: (b, 0, j)),
            ],
            out_specs=(
                pl.BlockSpec((1, 1), lambda b, j: (0, 0), memory_space=smem),
                pl.BlockSpec((1, 1), lambda b, j: (0, 0), memory_space=smem),
            )),
        # Both axes "arbitrary": the SMEM loss accumulators are shared across
        # the whole grid.  # TODO(synk): per-batch partial outputs would allow
        # a 'parallel' B axis (v7x megacore) at the cost of a tiny XLA-side sum.
        compiler_params=pltpu.CompilerParams(
            dimension_semantics=("arbitrary", "arbitrary")),
        cost_estimate=cost,
    )(pd, pb, an, tb, weight)

    tss = target_scores_sum.astype(f32)
    return iou_sum[0, 0] / tss, dfl_sum[0, 0] / tss


def reference_bbox_loss(pred_dist, pred_bboxes, anchor_points, target_bboxes,
                        target_scores, target_scores_sum, fg_mask, reg_max=16):
    """Pure-JAX reference (masked formulation, same math as the PyTorch module)."""
    B, A, _ = pred_dist.shape
    mask = fg_mask.astype(jnp.float32)
    weight = target_scores.sum(-1) * mask
    b1, b2 = pred_bboxes, target_bboxes
    inter = (jnp.maximum(jnp.minimum(b1[..., 2], b2[..., 2]) - jnp.maximum(b1[..., 0], b2[..., 0]), 0.0) *
             jnp.maximum(jnp.minimum(b1[..., 3], b2[..., 3]) - jnp.maximum(b1[..., 1], b2[..., 1]), 0.0))
    union = ((b1[..., 2] - b1[..., 0]) * (b1[..., 3] - b1[..., 1]) +
             (b2[..., 2] - b2[..., 0]) * (b2[..., 3] - b2[..., 1]) - inter + EPS)
    iou = inter / union
    loss_iou = jnp.sum((1.0 - iou) * weight) / target_scores_sum

    a = anchor_points[None]
    ltrb = jnp.concatenate([a - b2[..., :2], b2[..., 2:] - a], -1)
    ltrb = jnp.clip(ltrb, 0.0, reg_max - 1 - 0.01)
    tl = ltrb.astype(jnp.int32)
    wl = (tl.astype(jnp.float32) + 1.0) - ltrb
    wr = 1.0 - wl
    logits = pred_dist.reshape(B, A, 4, reg_max)
    logp = jax.nn.log_softmax(logits, -1)
    ce_l = -jnp.take_along_axis(logp, tl[..., None], axis=-1)[..., 0]
    ce_r = -jnp.take_along_axis(logp, (tl + 1)[..., None], axis=-1)[..., 0]
    dfl = (ce_l * wl + ce_r * wr).mean(-1)
    loss_dfl = jnp.sum(dfl * weight) / target_scores_sum
    return loss_iou, loss_dfl


if __name__ == "__main__":
    B, A, C, R = 2, 8, 4, 16

    key = jax.random.PRNGKey(0)
    ks = jax.random.split(key, 8)

    anchor_points = jax.random.uniform(ks[0], (A, 2), minval=3.0, maxval=12.0)

    def make_boxes(k):
        off = jax.random.uniform(k, (B, A, 2), minval=-1.0, maxval=1.0)
        wh = jax.random.uniform(jax.random.fold_in(k, 1), (B, A, 2), minval=1.0, maxval=6.0)
        ctr = anchor_points[None] + off
        return jnp.concatenate([ctr - wh / 2.0, ctr + wh / 2.0], axis=-1)

    pred_bboxes = make_boxes(ks[1])
    target_bboxes = make_boxes(ks[2])
    pred_dist = jax.random.normal(ks[3], (B, A, 4 * R), dtype=jnp.float32)
    target_scores = jax.random.uniform(ks[4], (B, A, C))
    fg_mask = jax.random.uniform(ks[5], (B, A)) > 0.4
    target_scores_sum = jnp.maximum(target_scores.sum(), 1.0)

    li, ld = bbox_loss(pred_dist, pred_bboxes, anchor_points, target_bboxes,
                       target_scores, target_scores_sum, fg_mask)
    jax.block_until_ready((li, ld))

    # The kernel streams pred_dist as bf16 (bandwidth optimization), so compare
    # against the reference fed identically-quantized logits.
    pred_dist_q = pred_dist.astype(jnp.bfloat16).astype(jnp.float32)
    rli, rld = reference_bbox_loss(pred_dist_q, pred_bboxes, anchor_points, target_bboxes,
                                   target_scores, target_scores_sum, fg_mask, reg_max=R)
    assert abs(float(li) - float(rli)) < 1e-4, (float(li), float(rli))
    assert abs(float(ld) - float(rld)) < 1e-4, (float(ld), float(rld))

    print("KERNEL_OK")
</pallas_src>

<mosaic_0001>
module attributes {stable_mosaic.version = 11 : i64} {
  func.func @bbox_loss_kernel(%arg0: i32, %arg1: i32, %arg2: memref<1x4x16x128xbf16, #tpu.memory_space<vmem>>, %arg3: memref<1x4x128xf32, #tpu.memory_space<vmem>>, %arg4: memref<2x128xf32, #tpu.memory_space<vmem>>, %arg5: memref<1x4x128xf32, #tpu.memory_space<vmem>>, %arg6: memref<1x1x128xf32, #tpu.memory_space<vmem>>, %arg7: memref<1x1xf32, #tpu.memory_space<smem>>, %arg8: memref<1x1xf32, #tpu.memory_space<smem>>) attributes {dimension_semantics = [#tpu.dimension_semantics<arbitrary>, #tpu.dimension_semantics<arbitrary>], iteration_bounds = array<i64: 2, 1>, scalar_prefetch = 0 : i64, scratch_operands = 0 : i64, tpu.core_type = #tpu.core_type<tc>, window_params = [{transform_indices = @transform_0, window_bounds = array<i64: 1, 4, 16, 128>}, {transform_indices = @transform_1, window_bounds = array<i64: 1, 4, 128>}, {transform_indices = @transform_2, window_bounds = array<i64: 2, 128>}, {transform_indices = @transform_3, window_bounds = array<i64: 1, 4, 128>}, {transform_indices = @transform_4, window_bounds = array<i64: 1, 1, 128>}, {transform_indices = @transform_5, window_bounds = array<i64: 1, 1>}, {transform_indices = @transform_6, window_bounds = array<i64: 1, 1>}]} {
    %c0_i32 = arith.constant 0 : i32
    %0 = arith.cmpi eq, %arg0, %c0_i32 : i32
    %c0_i32_0 = arith.constant 0 : i32
    %1 = arith.cmpi eq, %arg1, %c0_i32_0 : i32
    %2 = arith.andi %0, %1 : i1
    %3 = arith.extui %2 : i1 to i32
    %c0_i32_1 = arith.constant 0 : i32
    %4 = arith.cmpi ne, %3, %c0_i32_1 : i32
    scf.if %4 {
      %cst_84 = arith.constant 0.000000e+00 : f32
      %c0_85 = arith.constant 0 : index
      %c0_86 = arith.constant 0 : index
      %247 = memref.load %arg7[%c0_85, %c0_86] : memref<1x1xf32, #tpu.memory_space<smem>>
      memref.store %cst_84, %arg7[%c0_85, %c0_86] : memref<1x1xf32, #tpu.memory_space<smem>>
      %cst_87 = arith.constant 0.000000e+00 : f32
      %c0_88 = arith.constant 0 : index
      %c0_89 = arith.constant 0 : index
      %248 = memref.load %arg8[%c0_88, %c0_89] : memref<1x1xf32, #tpu.memory_space<smem>>
      memref.store %cst_87, %arg8[%c0_88, %c0_89] : memref<1x1xf32, #tpu.memory_space<smem>>
    } else {
    }
    %c0 = arith.constant 0 : index
    %c0_2 = arith.constant 0 : index
    %c0_3 = arith.constant 0 : index
    %5 = vector.load %arg6[%c0, %c0_2, %c0_3] : memref<1x1x128xf32, #tpu.memory_space<vmem>>, vector<1x1x128xf32>
    %6 = vector.shape_cast %5 : vector<1x1x128xf32> to vector<1x128xf32>
    %c0_4 = arith.constant 0 : index
    %c0_5 = arith.constant 0 : index
    %c0_6 = arith.constant 0 : index
    %7 = vector.load %arg3[%c0_4, %c0_5, %c0_6] : memref<1x4x128xf32, #tpu.memory_space<vmem>>, vector<1x4x128xf32>
    %8 = vector.shape_cast %7 : vector<1x4x128xf32> to vector<4x128xf32>
    %c0_7 = arith.constant 0 : index
    %c0_8 = arith.constant 0 : index
    %c0_9 = arith.constant 0 : index
    %9 = vector.load %arg5[%c0_7, %c0_8, %c0_9] : memref<1x4x128xf32, #tpu.memory_space<vmem>>, vector<1x4x128xf32>
    %10 = vector.shape_cast %9 : vector<1x4x128xf32> to vector<4x128xf32>
    %c0_10 = arith.constant 0 : index
    %c0_11 = arith.constant 0 : index
    %11 = vector.load %arg4[%c0_10, %c0_11] : memref<2x128xf32, #tpu.memory_space<vmem>>, vector<2x128xf32>
    %12 = vector.extract_strided_slice %8 {offsets = [0, 0], sizes = [1, 128], strides = [1, 1]} : vector<4x128xf32> to vector<1x128xf32>
    %13 = vector.extract_strided_slice %8 {offsets = [1, 0], sizes = [1, 128], strides = [1, 1]} : vector<4x128xf32> to vector<1x128xf32>
    %14 = vector.extract_strided_slice %8 {offsets = [2, 0], sizes = [1, 128], strides = [1, 1]} : vector<4x128xf32> to vector<1x128xf32>
    %15 = vector.extract_strided_slice %8 {offsets = [3, 0], sizes = [1, 128], strides = [1, 1]} : vector<4x128xf32> to vector<1x128xf32>
    %16 = vector.extract_strided_slice %10 {offsets = [0, 0], sizes = [1, 128], strides = [1, 1]} : vector<4x128xf32> to vector<1x128xf32>
    %17 = vector.extract_strided_slice %10 {offsets = [1, 0], sizes = [1, 128], strides = [1, 1]} : vector<4x128xf32> to vector<1x128xf32>
    %18 = vector.extract_strided_slice %10 {offsets = [2, 0], sizes = [1, 128], strides = [1, 1]} : vector<4x128xf32> to vector<1x128xf32>
    %19 = vector.extract_strided_slice %10 {offsets = [3, 0], sizes = [1, 128], strides = [1, 1]} : vector<4x128xf32> to vector<1x128xf32>
    %20 = arith.minimumf %14, %18 : vector<1x128xf32>
    %21 = arith.maximumf %12, %16 : vector<1x128xf32>
    %22 = arith.subf %20, %21 : vector<1x128xf32>
    %cst = arith.constant 0.000000e+00 : f32
    %23 = vector.broadcast %cst : f32 to vector<1x128xf32>
    %24 = arith.maximumf %22, %23 : vector<1x128xf32>
    %25 = arith.minimumf %15, %19 : vector<1x128xf32>
    %26 = arith.maximumf %13, %17 : vector<1x128xf32>
    %27 = arith.subf %25, %26 : vector<1x128xf32>
    %cst_12 = arith.constant 0.000000e+00 : f32
    %28 = vector.broadcast %cst_12 : f32 to vector<1x128xf32>
    %29 = arith.maximumf %27, %28 : vector<1x128xf32>
    %30 = arith.mulf %24, %29 : vector<1x128xf32>
    %31 = arith.subf %14, %12 : vector<1x128xf32>
    %32 = arith.subf %15, %13 : vector<1x128xf32>
    %33 = arith.mulf %31, %32 : vector<1x128xf32>
    %34 = arith.subf %18, %16 : vector<1x128xf32>
    %35 = arith.subf %19, %17 : vector<1x128xf32>
    %36 = arith.mulf %34, %35 : vector<1x128xf32>
    %37 = arith.addf %33, %36 : vector<1x128xf32>
    %38 = arith.subf %37, %30 : vector<1x128xf32>
    %cst_13 = arith.constant 1.000000e-07 : f32
    %39 = vector.broadcast %cst_13 : f32 to vector<1x128xf32>
    %40 = arith.addf %38, %39 : vector<1x128xf32>
    %41 = tpu.reciprocal %40 {approx = true} : vector<1x128xf32> -> vector<1x128xf32>
    %42 = arith.mulf %40, %41 : vector<1x128xf32>
    %cst_14 = arith.constant 2.000000e+00 : f32
    %43 = vector.broadcast %cst_14 : f32 to vector<1x128xf32>
    %44 = arith.subf %43, %42 : vector<1x128xf32>
    %45 = arith.mulf %41, %44 : vector<1x128xf32>
    %46 = arith.mulf %30, %45 : vector<1x128xf32>
    %c0_15 = arith.constant 0 : index
    %c0_16 = arith.constant 0 : index
    %47 = memref.load %arg7[%c0_15, %c0_16] : memref<1x1xf32, #tpu.memory_space<smem>>
    %cst_17 = arith.constant 1.000000e+00 : f32
    %48 = vector.broadcast %cst_17 : f32 to vector<1x128xf32>
    %49 = arith.subf %48, %46 : vector<1x128xf32>
    %50 = arith.mulf %49, %6 : vector<1x128xf32>
    %51 = vector.shape_cast %50 : vector<1x128xf32> to vector<1x1x128xf32>
    %cst_18 = arith.constant dense<0.000000e+00> : vector<1xf32>
    %52 = vector.multi_reduction <add>, %51, %cst_18 [1, 2] : vector<1x1x128xf32> to vector<1xf32>
    %53 = vector.shape_cast %52 : vector<1xf32> to vector<1x1x1xf32>
    %54 = vector.extract %53[0, 0, 0] : f32 from vector<1x1x1xf32>
    %55 = arith.addf %47, %54 : f32
    %c0_19 = arith.constant 0 : index
    %c0_20 = arith.constant 0 : index
    %56 = memref.load %arg7[%c0_19, %c0_20] : memref<1x1xf32, #tpu.memory_space<smem>>
    memref.store %55, %arg7[%c0_19, %c0_20] : memref<1x1xf32, #tpu.memory_space<smem>>
    %57 = vector.extract_strided_slice %11 {offsets = [0, 0], sizes = [1, 128], strides = [1, 1]} : vector<2x128xf32> to vector<1x128xf32>
    %58 = vector.extract_strided_slice %11 {offsets = [1, 0], sizes = [1, 128], strides = [1, 1]} : vector<2x128xf32> to vector<1x128xf32>
    %59 = arith.subf %57, %16 : vector<1x128xf32>
    %60 = arith.subf %58, %17 : vector<1x128xf32>
    %61 = arith.subf %18, %57 : vector<1x128xf32>
    %62 = arith.subf %19, %58 : vector<1x128xf32>
    %63 = tpu.iota {dimensions = array<i32: 0>} : vector<16x128xi32>
    %cst_21 = arith.constant 0.000000e+00 : f32
    %64 = vector.broadcast %cst_21 : f32 to vector<1x128xf32>
    %cst_22 = arith.constant 0.000000e+00 : f32
    %cst_23 = arith.constant 1.499000e+01 : f32
    %65 = vector.broadcast %cst_22 : f32 to vector<1x128xf32>
    %66 = arith.maximumf %65, %59 : vector<1x128xf32>
    %67 = vector.broadcast %cst_23 : f32 to vector<1x128xf32>
    %68 = arith.minimumf %67, %66 : vector<1x128xf32>
    %69 = arith.fptosi %68 : vector<1x128xf32> to vector<1x128xi32>
    %70 = arith.sitofp %69 : vector<1x128xi32> to vector<1x128xf32>
    %cst_24 = arith.constant 1.000000e+00 : f32
    %71 = vector.broadcast %cst_24 : f32 to vector<1x128xf32>
    %72 = arith.addf %70, %71 : vector<1x128xf32>
    %73 = arith.subf %72, %68 : vector<1x128xf32>
    %cst_25 = arith.constant 1.000000e+00 : f32
    %74 = vector.broadcast %cst_25 : f32 to vector<1x128xf32>
    %75 = arith.subf %74, %73 : vector<1x128xf32>
    %c0_26 = arith.constant 0 : index
    %c0_27 = arith.constant 0 : index
    %c0_28 = arith.constant 0 : index
    %c0_29 = arith.constant 0 : index
    %76 = vector.load %arg2[%c0_26, %c0_27, %c0_28, %c0_29] : memref<1x4x16x128xbf16, #tpu.memory_space<vmem>>, vector<1x1x16x128xbf16>
    %77 = vector.shape_cast %76 : vector<1x1x16x128xbf16> to vector<16x128xbf16>
    %78 = arith.extf %77 : vector<16x128xbf16> to vector<16x128xf32>
    %cst_30 = arith.constant dense<0xFF800000> : vector<128xf32>
    %79 = vector.multi_reduction <maximumf>, %78, %cst_30 [0] : vector<16x128xf32> to vector<128xf32>
    %80 = vector.shape_cast %79 : vector<128xf32> to vector<1x128xf32>
    %81 = vector.broadcast %80 : vector<1x128xf32> to vector<16x128xf32>
    %82 = arith.subf %78, %81 : vector<16x128xf32>
    %83 = math.exp %82 : vector<16x128xf32>
    %cst_31 = arith.constant dense<0.000000e+00> : vector<128xf32>
    %84 = vector.multi_reduction <add>, %83, %cst_31 [0] : vector<16x128xf32> to vector<128xf32>
    %85 = vector.shape_cast %84 : vector<128xf32> to vector<1x128xf32>
    %86 = math.log %85 : vector<1x128xf32>
    %87 = arith.addf %86, %80 : vector<1x128xf32>
    %88 = vector.broadcast %69 : vector<1x128xi32> to vector<16x128xi32>
    %89 = arith.cmpi eq, %63, %88 : vector<16x128xi32>
    %cst_32 = arith.constant 0.000000e+00 : f32
    %90 = vector.broadcast %cst_32 : f32 to vector<16x128xf32>
    %91 = arith.select %89, %78, %90 : vector<16x128xi1>, vector<16x128xf32>
    %cst_33 = arith.constant dense<0.000000e+00> : vector<128xf32>
    %92 = vector.multi_reduction <add>, %91, %cst_33 [0] : vector<16x128xf32> to vector<128xf32>
    %93 = vector.shape_cast %92 : vector<128xf32> to vector<1x128xf32>
    %c1_i32 = arith.constant 1 : i32
    %94 = vector.broadcast %c1_i32 : i32 to vector<1x128xi32>
    %95 = arith.addi %69, %94 : vector<1x128xi32>
    %96 = vector.broadcast %95 : vector<1x128xi32> to vector<16x128xi32>
    %97 = arith.cmpi eq, %63, %96 : vector<16x128xi32>
    %cst_34 = arith.constant 0.000000e+00 : f32
    %98 = vector.broadcast %cst_34 : f32 to vector<16x128xf32>
    %99 = arith.select %97, %78, %98 : vector<16x128xi1>, vector<16x128xf32>
    %cst_35 = arith.constant dense<0.000000e+00> : vector<128xf32>
    %100 = vector.multi_reduction <add>, %99, %cst_35 [0] : vector<16x128xf32> to vector<128xf32>
    %101 = vector.shape_cast %100 : vector<128xf32> to vector<1x128xf32>
    %102 = arith.subf %87, %93 : vector<1x128xf32>
    %103 = arith.mulf %102, %73 : vector<1x128xf32>
    %104 = arith.addf %64, %103 : vector<1x128xf32>
    %105 = arith.subf %87, %101 : vector<1x128xf32>
    %106 = arith.mulf %105, %75 : vector<1x128xf32>
    %107 = arith.addf %104, %106 : vector<1x128xf32>
    %cst_36 = arith.constant 0.000000e+00 : f32
    %cst_37 = arith.constant 1.499000e+01 : f32
    %108 = vector.broadcast %cst_36 : f32 to vector<1x128xf32>
    %109 = arith.maximumf %108, %60 : vector<1x128xf32>
    %110 = vector.broadcast %cst_37 : f32 to vector<1x128xf32>
    %111 = arith.minimumf %110, %109 : vector<1x128xf32>
    %112 = arith.fptosi %111 : vector<1x128xf32> to vector<1x128xi32>
    %113 = arith.sitofp %112 : vector<1x128xi32> to vector<1x128xf32>
    %cst_38 = arith.constant 1.000000e+00 : f32
    %114 = vector.broadcast %cst_38 : f32 to vector<1x128xf32>
    %115 = arith.addf %113, %114 : vector<1x128xf32>
    %116 = arith.subf %115, %111 : vector<1x128xf32>
    %cst_39 = arith.constant 1.000000e+00 : f32
    %117 = vector.broadcast %cst_39 : f32 to vector<1x128xf32>
    %118 = arith.subf %117, %116 : vector<1x128xf32>
    %c0_40 = arith.constant 0 : index
    %c1 = arith.constant 1 : index
    %c0_41 = arith.constant 0 : index
    %c0_42 = arith.constant 0 : index
    %119 = vector.load %arg2[%c0_40, %c1, %c0_41, %c0_42] : memref<1x4x16x128xbf16, #tpu.memory_space<vmem>>, vector<1x1x16x128xbf16>
    %120 = vector.shape_cast %119 : vector<1x1x16x128xbf16> to vector<16x128xbf16>
    %121 = arith.extf %120 : vector<16x128xbf16> to vector<16x128xf32>
    %cst_43 = arith.constant dense<0xFF800000> : vector<128xf32>
    %122 = vector.multi_reduction <maximumf>, %121, %cst_43 [0] : vector<16x128xf32> to vector<128xf32>
    %123 = vector.shape_cast %122 : vector<128xf32> to vector<1x128xf32>
    %124 = vector.broadcast %123 : vector<1x128xf32> to vector<16x128xf32>
    %125 = arith.subf %121, %124 : vector<16x128xf32>
    %126 = math.exp %125 : vector<16x128xf32>
    %cst_44 = arith.constant dense<0.000000e+00> : vector<128xf32>
    %127 = vector.multi_reduction <add>, %126, %cst_44 [0] : vector<16x128xf32> to vector<128xf32>
    %128 = vector.shape_cast %127 : vector<128xf32> to vector<1x128xf32>
    %129 = math.log %128 : vector<1x128xf32>
    %130 = arith.addf %129, %123 : vector<1x128xf32>
    %131 = vector.broadcast %112 : vector<1x128xi32> to vector<16x128xi32>
    %132 = arith.cmpi eq, %63, %131 : vector<16x128xi32>
    %cst_45 = arith.constant 0.000000e+00 : f32
    %133 = vector.broadcast %cst_45 : f32 to vector<16x128xf32>
    %134 = arith.select %132, %121, %133 : vector<16x128xi1>, vector<16x128xf32>
    %cst_46 = arith.constant dense<0.000000e+00> : vector<128xf32>
    %135 = vector.multi_reduction <add>, %134, %cst_46 [0] : vector<16x128xf32> to vector<128xf32>
    %136 = vector.shape_cast %135 : vector<128xf32> to vector<1x128xf32>
    %c1_i32_47 = arith.constant 1 : i32
    %137 = vector.broadcast %c1_i32_47 : i32 to vector<1x128xi32>
    %138 = arith.addi %112, %137 : vector<1x128xi32>
    %139 = vector.broadcast %138 : vector<1x128xi32> to vector<16x128xi32>
    %140 = arith.cmpi eq, %63, %139 : vector<16x128xi32>
    %cst_48 = arith.constant 0.000000e+00 : f32
    %141 = vector.broadcast %cst_48 : f32 to vector<16x128xf32>
    %142 = arith.select %140, %121, %141 : vector<16x128xi1>, vector<16x128xf32>
    %cst_49 = arith.constant dense<0.000000e+00> : vector<128xf32>
    %143 = vector.multi_reduction <add>, %142, %cst_49 [0] : vector<16x128xf32> to vector<128xf32>
    %144 = vector.shape_cast %143 : vector<128xf32> to vector<1x128xf32>
    %145 = arith.subf %130, %136 : vector<1x128xf32>
    %146 = arith.mulf %145, %116 : vector<1x128xf32>
    %147 = arith.addf %107, %146 : vector<1x128xf32>
    %148 = arith.subf %130, %144 : vector<1x128xf32>
    %149 = arith.mulf %148, %118 : vector<1x128xf32>
    %150 = arith.addf %147, %149 : vector<1x128xf32>
    %cst_50 = arith.constant 0.000000e+00 : f32
    %cst_51 = arith.constant 1.499000e+01 : f32
    %151 = vector.broadcast %cst_50 : f32 to vector<1x128xf32>
    %152 = arith.maximumf %151, %61 : vector<1x128xf32>
    %153 = vector.broadcast %cst_51 : f32 to vector<1x128xf32>
    %154 = arith.minimumf %153, %152 : vector<1x128xf32>
    %155 = arith.fptosi %154 : vector<1x128xf32> to vector<1x128xi32>
    %156 = arith.sitofp %155 : vector<1x128xi32> to vector<1x128xf32>
    %cst_52 = arith.constant 1.000000e+00 : f32
    %157 = vector.broadcast %cst_52 : f32 to vector<1x128xf32>
    %158 = arith.addf %156, %157 : vector<1x128xf32>
    %159 = arith.subf %158, %154 : vector<1x128xf32>
    %cst_53 = arith.constant 1.000000e+00 : f32
    %160 = vector.broadcast %cst_53 : f32 to vector<1x128xf32>
    %161 = arith.subf %160, %159 : vector<1x128xf32>
    %c0_54 = arith.constant 0 : index
    %c2 = arith.constant 2 : index
    %c0_55 = arith.constant 0 : index
    %c0_56 = arith.constant 0 : index
    %162 = vector.load %arg2[%c0_54, %c2, %c0_55, %c0_56] : memref<1x4x16x128xbf16, #tpu.memory_space<vmem>>, vector<1x1x16x128xbf16>
    %163 = vector.shape_cast %162 : vector<1x1x16x128xbf16> to vector<16x128xbf16>
    %164 = arith.extf %163 : vector<16x128xbf16> to vector<16x128xf32>
    %cst_57 = arith.constant dense<0xFF800000> : vector<128xf32>
    %165 = vector.multi_reduction <maximumf>, %164, %cst_57 [0] : vector<16x128xf32> to vector<128xf32>
    %166 = vector.shape_cast %165 : vector<128xf32> to vector<1x128xf32>
    %167 = vector.broadcast %166 : vector<1x128xf32> to vector<16x128xf32>
    %168 = arith.subf %164, %167 : vector<16x128xf32>
    %169 = math.exp %168 : vector<16x128xf32>
    %cst_58 = arith.constant dense<0.000000e+00> : vector<128xf32>
    %170 = vector.multi_reduction <add>, %169, %cst_58 [0] : vector<16x128xf32> to vector<128xf32>
    %171 = vector.shape_cast %170 : vector<128xf32> to vector<1x128xf32>
    %172 = math.log %171 : vector<1x128xf32>
    %173 = arith.addf %172, %166 : vector<1x128xf32>
    %174 = vector.broadcast %155 : vector<1x128xi32> to vector<16x128xi32>
    %175 = arith.cmpi eq, %63, %174 : vector<16x128xi32>
    %cst_59 = arith.constant 0.000000e+00 : f32
    %176 = vector.broadcast %cst_59 : f32 to vector<16x128xf32>
    %177 = arith.select %175, %164, %176 : vector<16x128xi1>, vector<16x128xf32>
    %cst_60 = arith.constant dense<0.000000e+00> : vector<128xf32>
    %178 = vector.multi_reduction <add>, %177, %cst_60 [0] : vector<16x128xf32> to vector<128xf32>
    %179 = vector.shape_cast %178 : vector<128xf32> to vector<1x128xf32>
    %c1_i32_61 = arith.constant 1 : i32
    %180 = vector.broadcast %c1_i32_61 : i32 to vector<1x128xi32>
    %181 = arith.addi %155, %180 : vector<1x128xi32>
    %182 = vector.broadcast %181 : vector<1x128xi32> to vector<16x128xi32>
    %183 = arith.cmpi eq, %63, %182 : vector<16x128xi32>
    %cst_62 = arith.constant 0.000000e+00 : f32
    %184 = vector.broadcast %cst_62 : f32 to vector<16x128xf32>
    %185 = arith.select %183, %164, %184 : vector<16x128xi1>, vector<16x128xf32>
    %cst_63 = arith.constant dense<0.000000e+00> : vector<128xf32>
    %186 = vector.multi_reduction <add>, %185, %cst_63 [0] : vector<16x128xf32> to vector<128xf32>
    %187 = vector.shape_cast %186 : vector<128xf32> to vector<1x128xf32>
    %188 = arith.subf %173, %179 : vector<1x128xf32>
    %189 = arith.mulf %188, %159 : vector<1x128xf32>
    %190 = arith.addf %150, %189 : vector<1x128xf32>
    %191 = arith.subf %173, %187 : vector<1x128xf32>
    %192 = arith.mulf %191, %161 : vector<1x128xf32>
    %193 = arith.addf %190, %192 : vector<1x128xf32>
    %cst_64 = arith.constant 0.000000e+00 : f32
    %cst_65 = arith.constant 1.499000e+01 : f32
    %194 = vector.broadcast %cst_64 : f32 to vector<1x128xf32>
    %195 = arith.maximumf %194, %62 : vector<1x128xf32>
    %196 = vector.broadcast %cst_65 : f32 to vector<1x128xf32>
    %197 = arith.minimumf %196, %195 : vector<1x128xf32>
    %198 = arith.fptosi %197 : vector<1x128xf32> to vector<1x128xi32>
    %199 = arith.sitofp %198 : vector<1x128xi32> to vector<1x128xf32>
    %cst_66 = arith.constant 1.000000e+00 : f32
    %200 = vector.broadcast %cst_66 : f32 to vector<1x128xf32>
    %201 = arith.addf %199, %200 : vector<1x128xf32>
    %202 = arith.subf %201, %197 : vector<1x128xf32>
    %cst_67 = arith.constant 1.000000e+00 : f32
    %203 = vector.broadcast %cst_67 : f32 to vector<1x128xf32>
    %204 = arith.subf %203, %202 : vector<1x128xf32>
    %c0_68 = arith.constant 0 : index
    %c3 = arith.constant 3 : index
    %c0_69 = arith.constant 0 : index
    %c0_70 = arith.constant 0 : index
    %205 = vector.load %arg2[%c0_68, %c3, %c0_69, %c0_70] : memref<1x4x16x128xbf16, #tpu.memory_space<vmem>>, vector<1x1x16x128xbf16>
    %206 = vector.shape_cast %205 : vector<1x1x16x128xbf16> to vector<16x128xbf16>
    %207 = arith.extf %206 : vector<16x128xbf16> to vector<16x128xf32>
    %cst_71 = arith.constant dense<0xFF800000> : vector<128xf32>
    %208 = vector.multi_reduction <maximumf>, %207, %cst_71 [0] : vector<16x128xf32> to vector<128xf32>
    %209 = vector.shape_cast %208 : vector<128xf32> to vector<1x128xf32>
    %210 = vector.broadcast %209 : vector<1x128xf32> to vector<16x128xf32>
    %211 = arith.subf %207, %210 : vector<16x128xf32>
    %212 = math.exp %211 : vector<16x128xf32>
    %cst_72 = arith.constant dense<0.000000e+00> : vector<128xf32>
    %213 = vector.multi_reduction <add>, %212, %cst_72 [0] : vector<16x128xf32> to vector<128xf32>
    %214 = vector.shape_cast %213 : vector<128xf32> to vector<1x128xf32>
    %215 = math.log %214 : vector<1x128xf32>
    %216 = arith.addf %215, %209 : vector<1x128xf32>
    %217 = vector.broadcast %198 : vector<1x128xi32> to vector<16x128xi32>
    %218 = arith.cmpi eq, %63, %217 : vector<16x128xi32>
    %cst_73 = arith.constant 0.000000e+00 : f32
    %219 = vector.broadcast %cst_73 : f32 to vector<16x128xf32>
    %220 = arith.select %218, %207, %219 : vector<16x128xi1>, vector<16x128xf32>
    %cst_74 = arith.constant dense<0.000000e+00> : vector<128xf32>
    %221 = vector.multi_reduction <add>, %220, %cst_74 [0] : vector<16x128xf32> to vector<128xf32>
    %222 = vector.shape_cast %221 : vector<128xf32> to vector<1x128xf32>
    %c1_i32_75 = arith.constant 1 : i32
    %223 = vector.broadcast %c1_i32_75 : i32 to vector<1x128xi32>
    %224 = arith.addi %198, %223 : vector<1x128xi32>
    %225 = vector.broadcast %224 : vector<1x128xi32> to vector<16x128xi32>
    %226 = arith.cmpi eq, %63, %225 : vector<16x128xi32>
    %cst_76 = arith.constant 0.000000e+00 : f32
    %227 = vector.broadcast %cst_76 : f32 to vector<16x128xf32>
    %228 = arith.select %226, %207, %227 : vector<16x128xi1>, vector<16x128xf32>
    %cst_77 = arith.constant dense<0.000000e+00> : vector<128xf32>
    %229 = vector.multi_reduction <add>, %228, %cst_77 [0] : vector<16x128xf32> to vector<128xf32>
    %230 = vector.shape_cast %229 : vector<128xf32> to vector<1x128xf32>
    %231 = arith.subf %216, %222 : vector<1x128xf32>
    %232 = arith.mulf %231, %202 : vector<1x128xf32>
    %233 = arith.addf %193, %232 : vector<1x128xf32>
    %234 = arith.subf %216, %230 : vector<1x128xf32>
    %235 = arith.mulf %234, %204 : vector<1x128xf32>
    %236 = arith.addf %233, %235 : vector<1x128xf32>
    %c0_78 = arith.constant 0 : index
    %c0_79 = arith.constant 0 : index
    %237 = memref.load %arg8[%c0_78, %c0_79] : memref<1x1xf32, #tpu.memory_space<smem>>
    %cst_80 = arith.constant 2.500000e-01 : f32
    %238 = vector.broadcast %cst_80 : f32 to vector<1x128xf32>
    %239 = arith.mulf %238, %6 : vector<1x128xf32>
    %240 = arith.mulf %236, %239 : vector<1x128xf32>
    %241 = vector.shape_cast %240 : vector<1x128xf32> to vector<1x1x128xf32>
    %cst_81 = arith.constant dense<0.000000e+00> : vector<1xf32>
    %242 = vector.multi_reduction <add>, %241, %cst_81 [1, 2] : vector<1x1x128xf32> to vector<1xf32>
    %243 = vector.shape_cast %242 : vector<1xf32> to vector<1x1x1xf32>
    %244 = vector.extract %243[0, 0, 0] : f32 from vector<1x1x1xf32>
    %245 = arith.addf %237, %244 : f32
    %c0_82 = arith.constant 0 : index
    %c0_83 = arith.constant 0 : index
    %246 = memref.load %arg8[%c0_82, %c0_83] : memref<1x1xf32, #tpu.memory_space<smem>>
    memref.store %245, %arg8[%c0_82, %c0_83] : memref<1x1xf32, #tpu.memory_space<smem>>
    return
  }
  func.func @transform_0(%arg0: i32, %arg1: i32) -> (i32, i32, i32, i32) {
    %c0_i32 = arith.constant 0 : i32
    %c0_i32_0 = arith.constant 0 : i32
    %c0_i32_1 = arith.constant 0 : i32
    return %arg0, %c0_i32, %c0_i32_0, %arg1 : i32, i32, i32, i32
  }
  func.func @transform_1(%arg0: i32, %arg1: i32) -> (i32, i32, i32) {
    %c0_i32 = arith.constant 0 : i32
    %c0_i32_0 = arith.constant 0 : i32
    return %arg0, %c0_i32, %arg1 : i32, i32, i32
  }
  func.func @transform_2(%arg0: i32, %arg1: i32) -> (i32, i32) {
    %c0_i32 = arith.constant 0 : i32
    %c0_i32_0 = arith.constant 0 : i32
    return %c0_i32, %arg1 : i32, i32
  }
  func.func @transform_3(%arg0: i32, %arg1: i32) -> (i32, i32, i32) {
    %c0_i32 = arith.constant 0 : i32
    %c0_i32_0 = arith.constant 0 : i32
    return %arg0, %c0_i32, %arg1 : i32, i32, i32
  }
  func.func @transform_4(%arg0: i32, %arg1: i32) -> (i32, i32, i32) {
    %c0_i32 = arith.constant 0 : i32
    %c0_i32_0 = arith.constant 0 : i32
    return %arg0, %c0_i32, %arg1 : i32, i32, i32
  }
  func.func @transform_5(%arg0: i32, %arg1: i32) -> (i32, i32) {
    %c0_i32 = arith.constant 0 : i32
    %c0_i32_0 = arith.constant 0 : i32
    %c0_i32_1 = arith.constant 0 : i32
    return %c0_i32, %c0_i32_0 : i32, i32
  }
  func.func @transform_6(%arg0: i32, %arg1: i32) -> (i32, i32) {
    %c0_i32 = arith.constant 0 : i32
    %c0_i32_0 = arith.constant 0 : i32
    %c0_i32_1 = arith.constant 0 : i32
    return %c0_i32, %c0_i32_0 : i32, i32
  }
}

</mosaic_0001>

<bundles_post_ra>
// kernel: tpu_custom_call.1
= control target key start
LH: loop header
LB: loop body
LE: loop exit
PB: predicated region body
PF: predicated region fallthrough
CT: control target
= control target key end

     0   :  { %s1616_s0 = inlined_call_operand.hbm [shape: bf16[2,4,16,128], index: 0, kind: input, shape index: {}]   ;;  %s1617_s1 = inlined_call_operand.hbm [shape: f32[2,4,128], index: 1, kind: input, shape index: {}]   ;;  %s1618_s2 = inlined_call_operand.vmem [shape: f32[2,128], index: 2, kind: input, shape index: {}]   ;;  %s1619_s3 = inlined_call_operand.hbm [shape: f32[2,4,128], index: 3, kind: input, shape index: {}]   ;;  %s1620_s4 = inlined_call_operand.vmem [shape: f32[2,1,128], index: 4, kind: input, shape index: {}]   ;;  %s1621_s5 = inlined_call_operand.hbm [shape: f32[1,1], index: 5, kind: output, shape index: {0}]   ;;  %s1622_s6 = inlined_call_operand.hbm [shape: f32[1,1], index: 6, kind: output, shape index: {1}]  }
   0x1   :  { %1626 = sst [smem:[#allocation18_spill]] %s1617_s1 }
   0x2   :  { %1627 = sst [smem:[#allocation19_spill]] %s1619_s3 }
   0x3   :  { %12 = vsyncpa [#allocation3], 0 }
   0x4   :  { %14 = vsyncpa [#allocation3 + $0x1], 0 }
   0x5   :  { %15 = vsyncpa [#allocation6], 0 }
   0x6   :  { %17 = vsyncpa [#allocation6 + $0x1], 0 }
   0x7   :  { %18 = vsyncpa [#allocation4], 0 }
   0x8   :  { %19 = vsyncpa [#allocation10], 0  ;;  %s1316_s21 = smov 0   ;;  %s1318_s22 = smov 0  }
   0x9   :  { %s1320_s23 = smov 0   ;;  %s1322_s24 = smov 0  }
   0xa   :  { %s1324_s25 = smov 0   ;;  %s1326_s26 = smov 0  }
   0xb LB: > { %1628 = sst [smem:[#allocation15_spill]] %s1267_s25  ;;  %s1345_s27 = sadd.s32 4294967295, %s1271_s26   ;;  %s1271_s26 = sphi %s1326_s26, %s25_s26   ;;  %s1267_s25 = sphi %s1324_s25, %s1639_s25   ;;  %s1263_s24 = sphi %s1322_s24, %s1638_s24   ;;  %s1259_s23 = sphi %s1320_s23, %s1642_s23   ;;  %s1255_s22 = sphi %s1318_s22, %s1641_s22   ;;  %s1251_s21 = sphi %s1316_s21, %s1640_s21  }
   0xc   : > { %s37_s28 = sadd.s32 1, %s1267_s25  ;;  %s46_s29 = sadd.s32 1, %s1259_s23 }
   0xd   : > { %p39_p0 = scmp.ge.s32.totalorder %s37_s28, 2  ;;  %p53_p1 = scmp.ne.s32.totalorder %s1259_s23, %s1255_s22 }
   0xe   : > { %p54_p2 = scmp.eq.s32.totalorder %s1271_s26, 0  ;;  %p59_p4 = scmp.ne.s32.totalorder %s1255_s22, %s1251_s21 }
   0xf   : > { %s1644_s28 = smov (%p39_p0, %s37_s28), 0  ;;  %p60_p5 = scmp.eq.s32.totalorder %s1345_s27, 0 }
  0x10   : > { %1629 = sst [smem:[#allocation16_spill]] %s1644_s28  ;;  %p55_p3 = por %p54_p2, %p53_p1 }
  0x11   : > { %s41_s30 = ssub.s32 %s1267_s25, %s1644_s28  ;;  %p1358_p7 = por %p60_p5, %p59_p4 }
  0x12   : > { %p44_p6 = scmp.eq.s32.totalorder %s41_s30, 0  ;;  %p1021_p8 = scmp.lt.s32.totalorder %s1271_s26, 2 }
  0x13   : > { %s1367_s9 = sand.u32 1, %s1259_s23   ;;  %s264_s11 = sand.u32 1, %s1271_s26  }
  0x14   : > { %s1364_s8 = scalar_select %p44_p6, %s1259_s23, %s46_s29  }
  0x15   : > { %p1369_p9 = pnand %p1021_p8, %p55_p3  ;;  %s1623_s12 = sshll.u32 %s1367_s9, 2 }
  0x16   : > { %1631 = sst [smem:[#allocation17_spill]] %s1364_s8  ;;  %s946_s13 = sshll.u32 %s1267_s25, 6 }
  0x17   : > { %s1633_s1 = sld [smem:[#allocation18_spill]]  ;;  %s268_s17 = scalar_lea.vmem [#allocation5], %s1623_s12 }
  0x18   : > { %s276_s18 = sshll.u32 %s268_s17, 4  ;;  %s1381_s19 = scalar_lea.sflag [#allocation6], %s264_s11  ;;  %s277_s18 = int_to_ptr.vmem [resolvable:$true] %s276_s18 }
  0x19   : > { %p1107_p10 = pneg %p1369_p9  ;;  %s1118_s20 = scalar_lea.vmem %s277_s18, 64 }
  0x1a   : > { %p1119_p11 = scmp.ne.s32.totalorder %s277_s18, %s1118_s20  ;;  %s1273_s21 = smov [#allocation5]  }
  0x1b   : > { %s1123_s29 = sshll.u32 %s1273_s21, 4  ;;  %s1124_s29 = int_to_ptr.vmem [resolvable:$false] %s1123_s29 }
  0x1c   : > { %p1121_p12 = pnand %p1119_p11, %p1107_p10  ;;  %s1125_s30 = scalar_lea.vmem %s1124_s29, 128 }
  0x1d   : > { %s274_s16 = scalar_lea.hbm %s1633_s1, %s946_s13  ;;  %p1126_p0 = scmp.lt.s32.totalorder %s277_s18, %s1124_s29 }
  0x1e   : > { %p1122_p13 = pneg %p1121_p12  ;;  %p1127_p1 = scmp.lt.s32.totalorder %s1125_s30, %s1118_s20 }
  0x20   : > { %p1128_p2 = por %p1127_p1, %p1126_p0 }
  0x22   : > { %p1129_p3 = pnand %p1128_p2, %p1122_p13 }
  0x24   : > { %1132 = shalt.err (!%p1129_p3)
}
  0x25   : > { %1017 = dma.hbm_to_vmem [thread:$0]  (!%p1369_p9), %s274_s16, 64, %s277_s18, %s1381_s19  }
  0x26   : > { %s1634_s3 = sld [smem:[#allocation19_spill]]  ;;  %p949_p4 = scmp.ge.s32.totalorder %s1271_s26, 1 }
  0x27   : > { %p309_p5 = scmp.lt.s32.totalorder %s1271_s26, 3  ;;  %s942_s20 = sshll.u32 %s1367_s9, 5 }
  0x28   : > { %s966_s21 = sshll.u32 %s1267_s25, 9  ;;  %s246_s1 = scalar_lea.vmem [#allocation2], %s942_s20 }
  0x29   : > { %p1398_p6 = pnand %p949_p4, %p309_p5  ;;  %s253_s12 = scalar_lea.hbm %s1616_s0, %s966_s21 }
  0x2a   : > { %s254_s16 = sshll.u32 %s246_s1, 4  ;;  %s1636_s18 = sshll.u32 %s1367_s9, 2  ;;  %s255_s16 = int_to_ptr.vmem [resolvable:$true] %s254_s16 }
  0x2b   : > { %s287_s11 = scalar_lea.vmem [#allocation7], %s1636_s18  ;;  %s1274_s28 = smov [#allocation2]  }
  0x2c   : > { %s1394_s15 = scalar_lea.hbm %s1634_s3, %s946_s13  ;;  %s295_s14 = sshll.u32 %s287_s11, 4  ;;  %s296_s14 = int_to_ptr.vmem [resolvable:$true] %s295_s14 }
  0x2d   : > { %s243_s13 = scalar_lea.sflag [#allocation3], %s1367_s9  ;;  %s1146_s3 = scalar_lea.vmem %s255_s16, 512 }
  0x2e   : > { %p1147_p8 = scmp.ne.s32.totalorder %s255_s16, %s1146_s3  ;;  %s1151_s8 = sshll.u32 %s1274_s28, 4  ;;  %s1152_s8 = int_to_ptr.vmem [resolvable:$false] %s1151_s8 }
  0x2f   : > { %s1153_s25 = scalar_lea.vmem %s1152_s8, 1024  ;;  %p1154_p13 = scmp.lt.s32.totalorder %s255_s16, %s1152_s8 }
  0x30   : > { %p1149_p11 = pnand %p1147_p8, %p1107_p10  ;;  %p1155_p0 = scmp.lt.s32.totalorder %s1153_s25, %s1146_s3 }
  0x32   : > { %p1150_p12 = pneg %p1149_p11  ;;  %p1156_p1 = por %p1155_p0, %p1154_p13 }
  0x34   : > { %p1157_p2 = pnand %p1156_p1, %p1150_p12 }
  0x36   : > { %1160 = shalt.err (!%p1157_p2)
}
  0x37   : > { %s1275_s1 = smov 64   ;;  %s1276_s20 = smov 4  }
  0x38   : > { %1014 = dma.hbm_to_vmem [thread:$0]  (!%p1369_p9), %s253_s12, 512, %s255_s16, %s243_s13, %s1275_s1, %s1275_s1, %s1276_s20  }
  0x39   : > { %s1174_s9 = scalar_lea.vmem %s296_s14, 64  ;;  %s1277_s28 = smov [#allocation7]  }
  0x3a   : > { %p1175_p3 = scmp.ne.s32.totalorder %s296_s14, %s1174_s9  ;;  %s1179_s21 = sshll.u32 %s1277_s28, 4  ;;  %s1180_s21 = int_to_ptr.vmem [resolvable:$false] %s1179_s21 }
  0x3b   : > { %s1181_s3 = scalar_lea.vmem %s1180_s21, 128  ;;  %p1182_p8 = scmp.lt.s32.totalorder %s296_s14, %s1180_s21 }
  0x3c   : > { %p1177_p4 = pnand %p1175_p3, %p1107_p10  ;;  %p1183_p11 = scmp.lt.s32.totalorder %s1181_s3, %s1174_s9 }
  0x3e   : > { %p1178_p5 = pneg %p1177_p4  ;;  %p1184_p12 = por %p1183_p11, %p1182_p8 }
  0x40   : > { %p1185_p13 = pnand %p1184_p12, %p1178_p5 }
  0x42   : > { %1188 = shalt.err (!%p1185_p13)
}
  0x43   : > { %1020 = dma.hbm_to_vmem [thread:$0]  (!%p1369_p9), %s1394_s15, 64, %s296_s14, %s1381_s19  }
  0x44   : > { %313 = sbr.rel (%p1398_p6) target bundleno = 392 (0x188), region = 40  ;;  %s315_s25 = sand.u32 (!%p1398_p6), 1, %s1255_s22  }
  0x45   : > { %s950_s8 = sshll.u32 (!%p1398_p6), %s315_s25, 5  ;;  %s316_s12 = scalar_lea.sflag (!%p1398_p6), [#allocation3], %s315_s25 }
  0x46   : > { %s1425_s29 = scalar_lea.vmem (!%p1398_p6), [#allocation2], %s950_s8 }
  0x49   : > { %1234 = dma.done.wait (%p1358_p7), %s316_s12, 512  }
  0x4a   : > { %1236 = vsyncadd (%p1358_p7), %s316_s12, 4294966784  ;;  %s324_s10 = sand.u32 1, %s1345_s27   ;;  %s951_s30 = sshll.u32 %s315_s25, 2 }
  0x4b   : > { %s325_s19 = scalar_lea.sflag [#allocation6], %s324_s10  ;;  %s328_s15 = scalar_lea.vmem [#allocation5], %s951_s30 }
  0x4c   : > { %1238 = dma.done.wait (%p1358_p7), %s325_s19, 128  }
  0x4d   : > { %1240 = vsyncadd (%p1358_p7), %s325_s19, 4294967168  ;;  %v402_v0 = vld [vmem:[%s328_s15] sm:$0xf]  ;;  %s337_s17 = scalar_lea.vmem [#allocation7], %s951_s30  ;;  %v984_v7 = vld [vmem:[%s1425_s29 + $0x8] sm:$0xff]   ;;  %v443_v43 = vlaneseq  ;;  %p385_p7 = scmp.lt.s32.totalorder %s1263_s24, 1 }
  0x4e   : > { %v403_v1 = vld [vmem:[%s337_s17] sm:$0xf]  ;;  %v417_v4 = vrot.slane %v402_v0, 6  ;;  %v969_v6 = vld [vmem:[%s1425_s29] sm:$0xff]   ;;  %v1442_v13 = vunpack.c.l.bf16 %v984_v7  ;;  %v1446_v15 = vunpack.c.h.bf16 %v984_v7  ;;  %v985_v37 = vld [vmem:[%s1425_s29 + $0x10] sm:$0xff]   ;;  %vm452_vm1 = vcmask 1040384  }
  0x4f   : > { %v405_v2 = vmin.f32 %v402_v0, %v403_v1  ;;  %v406_v3 = vmax.f32 %v402_v0, %v403_v1  ;;  %v425_v5 = vrot.slane %v403_v1, 6  ;;  %v1438_v8 = vunpack.c.l.bf16 %v969_v6  ;;  %v404_v26 = vld [vmem:[%s1618_s2] sm:$0x3]  ;;  %s386_s18 = scalar_select %p385_p7, %s1263_s24, 1  ;;  %v986_v60 = vld [vmem:[%s1425_s29 + $0x18] sm:$0xff]  }
  0x50   : > { %v1440_v9 = vunpack.c.h.bf16 %v969_v6  ;;  %v419_v11 = vsub.f32 %v402_v0, %v417_v4  ;;  %v550_v20 = vmax.f32 %v1442_v13, %v1446_v15  ;;  %v466_v32 = vsub.f32 %v404_v26, %v403_v1  ;;  %p391_p9 = scmp.eq.s32.totalorder %s1263_s24, 0  ;;  %s1278_s1 = smov 0.0  }
  0x51   : > { %v408_v10 = vrot.slane %v406_v3, 6  ;;  %v427_v12 = vsub.f32 %v403_v1, %v425_v5  ;;  %v1459_v39 = vunpack.c.l.bf16 %v985_v37  ;;  %v1461_v40 = vunpack.c.h.bf16 %v985_v37  ;;  %s390_s13 = scalar_lea.vmem %s1620_s4, %s386_s18  ;;  %p1022_p10 = scmp.eq.s32.totalorder %s1345_s27, 1 }
  0x52   : > { %v485_v14 = vmax.f32 %v1438_v8, %v1440_v9  ;;  %v421_v17 = vrot.slane %v419_v11, 1  ;;  %v551_v25 = vrot.slane %v550_v20, 4  ;;  %v1457_v38 = vmax.f32 %v466_v32, 0.0  ;;  %1001 = sst [smem:[#allocation8]] (%p391_p9), %s1278_s1  ;;  %s1279_s21 = smov [#allocation8]  }
  0x53   : > { %v410_v16 = vsub.f32 %v405_v2, %v408_v10  ;;  %v429_v18 = vrot.slane %v427_v12, 1  ;;  %v627_v47 = vmax.f32 %v1459_v39, %v1461_v40  ;;  %v468_v48 = vrot.slane %v404_v26, 6  ;;  %1002 = sst [smem:[#allocation9]] (%p391_p9), %s1278_s1  ;;  %s1280_s29 = smov [#allocation9]  }
  0x54   : > { %v486_v19 = vrot.slane %v485_v14, 4  ;;  %v423_v22 = vmul.f32 %v421_v17, %v419_v11  ;;  %v552_v31 = vmax.f32 %v550_v20, %v551_v25  ;;  %v475_v44 = vmin.f32 %v1457_v38, 14.99  ;;  %s440_s20 = sld [smem:[#allocation8]] }
  0x55   : > { %v411_v21 = vmax.f32 %v410_v16, 0.0  ;;  %v431_v23 = vmul.f32 %v429_v18, %v427_v12  ;;  %v1473_v51 = vshrl.u32 %v443_v43, 7  ;;  %v628_v58 = vrot.slane %v627_v47, 4  ;;  %v1498_v16 = vld [vmem:[%s390_s13] sm:$0x1]  ;;  %s763_s25 = sld [smem:[#allocation9]] }
  0x56   : > { %v487_v24 = vmax.f32 %v485_v14, %v486_v19  ;;  %v553_v36 = vrot.slane %v552_v31, 2  ;;  %v989_v52 = vtrunc.f32 %v475_v44  ;;  %v470_v59 = vsub.f32 %v403_v1, %v468_v48 }
  0x57   : > { %v413_v27 = vrot.slane %v411_v21, 1  ;;  %v432_v28 = vadd.f32 %v431_v23, %v423_v22  ;;  %v445_v61 = vsub.s32 0, %v1473_v51  ;;  %v629_v3 = vmax.f32 %v627_v47, %v628_v58 }
  0x58   : > { %v488_v30 = vrot.slane %v487_v24, 2  ;;  %v554_v42 = vmax.f32 %v552_v31, %v553_v36  ;;  %v1486_v62 = vcvt.f32.s32 %v989_v52  ;;  %v1488_v4 = vunpack.c.l.bf16 %v986_v60 }
  0x59   : > { %v1453_v29 = vmul.f32 %v413_v27, %v411_v21  ;;  %v1490_v5 = vunpack.c.h.bf16 %v986_v60  ;;  %v575_v6 = vsub.s32 1, %v1473_v51  ;;  %v615_v7 = vmax.f32 %v470_v59, 0.0 }
  0x5a   : > { %v489_v35 = vmax.f32 %v487_v24, %v488_v30  ;;  %v555_v46 = vrot.slane %v554_v42, 1  ;;  %v511_v10 = vrot.slane %v1486_v62, %v445_v61  ;;  %v523_v11 = vadd.s32 1, %v1486_v62 }
  0x5b   : > { %v433_v33 = vsub.f32 %v432_v28, %v1453_v29  ;;  %v630_v12 = vrot.slane %v629_v3, 2  ;;  %v1501_v17 = vadd.s32 8, %v1473_v51  ;;  %v698_v19 = vmax.f32 %v1488_v4, %v1490_v5 }
  0x5c   : > { %v490_v41 = vrot.slane %v489_v35, 1  ;;  %v1477_v53 = vmax.f32 %v554_v42, %v555_v46  ;;  %v576_v21 = vrot.slane %v1486_v62, %v575_v6  ;;  %v1506_v22 = vmin.f32 %v615_v7, 14.99 }
  0x5d   : > { %v434_v34 = vadd.f32 1e-07, %v433_v33  ;;  %v631_v18 = vmax.f32 %v629_v3, %v630_v12  ;;  %vm512_vm0 = vcmp.eq.s32.totalorder %v1473_v51, %v511_v10  ;;  %v527_v23 = vrot.slane %v523_v11, %v445_v61 }
  0x5e   : > { %v1464_v45 = vmax.f32 %v489_v35, %v490_v41  ;;  %v557_v56 = vsub.f32 %v1442_v13, %v1477_v53  ;;  %v558_v57 = vsub.f32 %v1446_v15, %v1477_v53  ;;  %v699_v25 = vrot.slane %v698_v19, 4 }
  0x5f   : > { %1079 = vrcp.f32 %v434_v34  ;;  %v632_v24 = vrot.slane %v631_v18, 1  ;;  %v446_v27 = vrot.slane %v1498_v16, %v445_v61  ;;  %vm513_vm2 = vcmp.eq.s32.totalorder %v1501_v17, %v511_v10 }
  0x60   : > { %v492_v49 = vsub.f32 %v1438_v8, %v1464_v45  ;;  %v493_v50 = vsub.f32 %v1440_v9, %v1464_v45  ;;  %v559_v63 = vmul.f32 1.442695, %v557_v56  ;;  %v561_v0 = vmul.f32 1.442695, %v558_v57 }
  0x61   : > { %v1512_v28 = vmax.f32 %v631_v18, %v632_v24  ;;  %v652_v30 = vsub.s32 2, %v1473_v51  ;;  %v700_v31 = vmax.f32 %v698_v19, %v699_v25  ;;  %v514_v33 = vsel %vm512_vm0, %v1438_v8, 0.0 }
  0x62   : > { %v494_v54 = vmul.f32 1.442695, %v492_v49  ;;  %v496_v55 = vmul.f32 1.442695, %v493_v50  ;;  %vm577_vm3 = vcmp.eq.s32.totalorder %v1473_v51, %v576_v21  ;;  %vm528_vm4 = vcmp.eq.s32.totalorder %v1473_v51, %v527_v23 }
  0x63   : > { %v635_v36 = vsub.f32 %v1461_v40, %v1512_v28  ;;  %v701_v37 = vrot.slane %v700_v31, 2  ;;  %v515_v43 = vsel %vm513_vm2, %v1440_v9, 0.0  ;;  %vm529_vm5 = vcmp.eq.s32.totalorder %v1501_v17, %v527_v23 }
  0x64   : > { %1081 = vpow2.f32 %v494_v54  ;;  %vm578_vm6 = vcmp.eq.s32.totalorder %v1501_v17, %v576_v21  ;;  %v591_v46 = vrot.slane %v523_v11, %v575_v6  ;;  %v530_v54 = vsel %vm528_vm4, %v1438_v8, 0.0 }
  0x65   : > { %1083 = vpow2.f32 %v496_v55  ;;  %v638_v49 = vmul.f32 1.442695, %v635_v36  ;;  %v579_v55 = vsel %vm577_vm3, %v1442_v13, 0.0  ;;  %v702_v56 = vmax.f32 %v700_v31, %v701_v37 }
  0x66   : > { %1085 = vpow2.f32 %v559_v63  ;;  %v531_v58 = vsel %vm529_vm5, %v1440_v9, 0.0  ;;  %v580_v63 = vsel %vm578_vm6, %v1446_v15, 0.0  ;;  %vm592_vm7 = vcmp.eq.s32.totalorder %v1473_v51, %v591_v46 }
  0x67   : > { %1087 = vpow2.f32 %v561_v0  ;;  %vm593_vm8 = vcmp.eq.s32.totalorder %v1501_v17, %v591_v46  ;;  %v516_v9 = vadd.f32 %v515_v43, %v514_v33  ;;  %v532_v3 = vadd.f32 %v531_v58, %v530_v54 }
  0x68   : > { %v581_v11 = vadd.f32 %v580_v63, %v579_v55  ;;  %v594_v12 = vsel %vm592_vm7, %v1442_v13, 0.0 }
  0x69   : > { %v517_v24 = vrot.slane %v516_v9, 4  ;;  %v533_v25 = vrot.slane %v532_v3, 4 }
  0x6b   : > { %v534_v37 = vadd.f32 %v533_v25, %v532_v3 }
  0x6c   : > { %v1080_v2 = vpop.eup %1079 }
  0x6d   : > { %v436_v1 = vmul.f32 %v1080_v2, %v434_v34  ;;  %v991_v34 = vtrunc.f32 %v1506_v22 }
  0x6f   : > { %v437_v14 = vsub.f32 2.0, %v436_v1  ;;  %v1531_v60 = vcvt.f32.s32 %v991_v34 }
  0x71   : > { %v438_v20 = vmul.f32 %v1080_v2, %v437_v14  ;;  %v1082_v35 = vpop.eup %1081  ;;  %v703_v2 = vrot.slane %v702_v56, 1  ;;  %v665_v7 = vadd.s32 1, %v1531_v60  ;;  %v595_v14 = vsel %vm593_vm8, %v1446_v15, 0.0 }
  0x72   : > { %v1084_v41 = vpop.eup %1083  ;;  %v596_v13 = vadd.f32 %v595_v14, %v594_v12  ;;  %v582_v15 = vrot.slane %v581_v11, 4 }
  0x73   : > { %v439_v26 = vmul.f32 %v438_v20, %v1453_v29  ;;  %v634_v29 = vsub.f32 %v1459_v39, %v1512_v28  ;;  %v498_v47 = vadd.f32 %v1084_v41, %v1082_v35  ;;  %v1086_v50 = vpop.eup %1085  ;;  %v1540_v10 = vmax.f32 %v702_v56, %v703_v2 }
  0x74   : > { %v1088_v57 = vpop.eup %1087  ;;  %v653_v20 = vrot.slane %v1531_v60, %v652_v30  ;;  %v669_v31 = vrot.slane %v665_v7, %v652_v30  ;;  %v535_v56 = vrot.slane %v534_v37, 2 }
  0x75   : > { %v441_v32 = vsub.f32 1.0, %v439_v26  ;;  %v636_v48 = vmul.f32 1.442695, %v634_v29  ;;  %v499_v59 = vrot.slane %v498_v47, 4  ;;  %v563_v0 = vadd.f32 %v1088_v57, %v1086_v50 }
  0x76   : > { %v705_v21 = vsub.f32 %v1488_v4, %v1540_v10  ;;  %v706_v23 = vsub.f32 %v1490_v5, %v1540_v10  ;;  %vm654_vm9 = vcmp.eq.s32.totalorder %v1473_v51, %v653_v20  ;;  %vm655_vm10 = vcmp.eq.s32.totalorder %v1501_v17, %v653_v20 }
  0x77   : > { %v448_v42 = vmul.f32 %v446_v27, %v441_v32  ;;  %1089 = vpow2.f32 %v636_v48  ;;  %v500_v8 = vadd.f32 %v499_v59, %v498_v47  ;;  %v564_v1 = vrot.slane %v563_v0, 4 }
  0x78   : > { %1091 = vpow2.f32 %v638_v49  ;;  %v707_v32 = vmul.f32 1.442695, %v705_v21  ;;  %v709_v33 = vmul.f32 1.442695, %v706_v23  ;;  %v518_v29 = vadd.f32 %v517_v24, %v516_v9 }
  0x79   : > { %v450_v52 = vrot.slane %v448_v42, 2  ;;  %v501_v6 = vrot.slane %v500_v8, 2  ;;  %v565_v18 = vadd.f32 %v564_v1, %v563_v0  ;;  %vm670_vm11 = vcmp.eq.s32.totalorder %v1473_v51, %v669_v31 }
  0x7a   : > { %1093 = vpow2.f32 %v707_v32  ;;  %vm671_vm12 = vcmp.eq.s32.totalorder %v1501_v17, %v669_v31  ;;  %v656_v42 = vsel %vm654_vm9, %v1459_v39, 0.0  ;;  %v657_v43 = vsel %vm655_vm10, %v1461_v40, 0.0 }
  0x7b   : > { %v453_v61 = vsel %vm452_vm1, %v450_v52, 0.0  ;;  %v502_v19 = vadd.f32 %v501_v6, %v500_v8  ;;  %v566_v26 = vrot.slane %v565_v18, 2  ;;  %1095 = vpow2.f32 %v709_v33 }
  0x7c   : > { %454 = vadd.xlane.f32.xlu0 %v453_v61  ;;  %v597_v47 = vrot.slane %v596_v13, 4  ;;  %v583_v48 = vadd.f32 %v582_v15, %v581_v11  ;;  %v723_v49 = vsub.s32 3, %v1473_v51  ;;  %v672_v52 = vsel %vm670_vm11, %v1459_v39, 0.0 }
  0x7d   : > { %v503_v27 = vrot.slane %v502_v19, 1  ;;  %v567_v34 = vadd.f32 %v566_v26, %v565_v18  ;;  %v673_v54 = vsel %vm671_vm12, %v1461_v40, 0.0  ;;  %v519_v55 = vrot.slane %v518_v29, 2 }
  0x7e   : > { %v658_v57 = vadd.f32 %v657_v43, %v656_v42  ;;  %v584_v59 = vrot.slane %v583_v48, 2  ;;  %v674_v61 = vadd.f32 %v673_v54, %v672_v52  ;;  %v724_v63 = vrot.slane %v1531_v60, %v723_v49 }
  0x7f   : > { %v504_v35 = vadd.f32 %v503_v27, %v502_v19  ;;  %v568_v36 = vrot.slane %v567_v34, 1  ;;  %v598_v0 = vadd.f32 %v597_v47, %v596_v13  ;;  %v739_v2 = vrot.slane %v665_v7, %v723_v49 }
  0x80   : > { %v520_v9 = vadd.f32 %v519_v55, %v518_v29  ;;  %v536_v3 = vadd.f32 %v535_v56, %v534_v37  ;;  %v477_v1 = vcvt.s32.f32 %v1486_v62  ;;  %v659_v6 = vrot.slane %v658_v57, 4 }
  0x81   : > { %1097 = vlog2.f32 %v504_v35  ;;  %v569_v41 = vadd.f32 %v568_v36, %v567_v34  ;;  %v585_v39 = vadd.f32 %v584_v59, %v583_v48  ;;  %v675_v12 = vrot.slane %v674_v61, 4 }
  0x82   : > { %vm725_vm13 = vcmp.eq.s32.totalorder %v1473_v51, %v724_v63  ;;  %vm726_vm14 = vcmp.eq.s32.totalorder %v1501_v17, %v724_v63  ;;  %v599_v14 = vrot.slane %v598_v0, 2  ;;  %vm740_vm15 = vcmp.eq.s32.totalorder %v1473_v51, %v739_v2 }
  0x83   : > { %1099 = vlog2.f32 %v569_v41  ;;  %vm741_vm0 = vcmp.eq.s32.totalorder %v1501_v17, %v739_v2  ;;  %v521_v19 = vrot.slane %v520_v9, 1  ;;  %v537_v20 = vrot.slane %v536_v3, 1 }
  0x84   : > { %v1090_v30 = vpop.eup %1089  ;;  %v478_v21 = vadd.f32 1.0, %v477_v1  ;;  %v660_v62 = vadd.f32 %v659_v6, %v658_v57  ;;  %v727_v26 = vsel %vm725_vm13, %v1488_v4, 0.0  ;;  %v728_v27 = vsel %vm726_vm14, %v1490_v5, 0.0 }
  0x85   : > { %v1092_v46 = vpop.eup %1091  ;;  %v676_v32 = vadd.f32 %v675_v12, %v674_v61  ;;  %v742_v33 = vsel %vm740_vm15, %v1488_v4, 0.0  ;;  %v743_v51 = vsel %vm741_vm0, %v1490_v5, 0.0  ;;  %v586_v13 = vrot.slane %v585_v39, 1 }
  0x86   : > { %v640_v50 = vadd.f32 %v1092_v46, %v1090_v30  ;;  %v600_v17 = vadd.f32 %v599_v14, %v598_v0  ;;  %v479_v29 = vsub.f32 %v478_v21, %v475_v44  ;;  %v522_v36 = vadd.f32 %v521_v19, %v520_v9 }
  0x87   : > { %v1094_v40 = vpop.eup %1093  ;;  %v729_v37 = vadd.f32 %v728_v27, %v727_v26  ;;  %v744_v42 = vadd.f32 %v743_v51, %v742_v33  ;;  %v538_v46 = vadd.f32 %v537_v20, %v536_v3  ;;  %v661_v4 = vrot.slane %v660_v62, 2 }
  0x88   : > { %v641_v58 = vrot.slane %v640_v50, 4  ;;  %v1096_v7 = vpop.eup %1095  ;;  %v677_v47 = vrot.slane %v676_v32, 2  ;;  %v587_v48 = vadd.f32 %v586_v13, %v585_v39  ;;  %v601_v49 = vrot.slane %v600_v17, 1 }
  0x89   : > { %v711_v25 = vadd.f32 %v1096_v7, %v1094_v40  ;;  %v480_v52 = vsub.f32 1.0, %v479_v29  ;;  %v730_v38 = vrot.slane %v729_v37, 4  ;;  %v745_v44 = vrot.slane %v744_v42, 4 }
  0x8a   : > { %v642_v8 = vadd.f32 %v641_v58, %v640_v50  ;;  %v618_v56 = vcvt.s32.f32 %v1531_v60  ;;  %v662_v57 = vadd.f32 %v661_v4, %v660_v62  ;;  %v678_v58 = vadd.f32 %v677_v47, %v676_v32 }
  0x8b   : > { %v712_v15 = vrot.slane %v711_v25, 4  ;;  %v602_v61 = vadd.f32 %v601_v49, %v600_v17  ;;  %v746_v2 = vadd.f32 %v745_v44, %v744_v42 }
  0x8c   : > { %v643_v11 = vrot.slane %v642_v8, 2  ;;  %v619_v9 = vadd.f32 1.0, %v618_v56  ;;  %v663_v3 = vrot.slane %v662_v57, 1  ;;  %v679_v1 = vrot.slane %v678_v58, 1 }
  0x8d   : > { %v713_v41 = vadd.f32 %v712_v15, %v711_v25  ;;  %v747_v40 = vrot.slane %v746_v2, 2 }
  0x8e   : > { %v644_v18 = vadd.f32 %v643_v11, %v642_v8  ;;  %v1098_v23 = vpop.eup %1097  ;;  %v731_v8 = vadd.f32 %v730_v38, %v729_v37  ;;  %v620_v14 = vsub.f32 %v619_v9, %v1506_v22  ;;  %v680_v7 = vadd.f32 %v679_v1, %v678_v58 }
  0x8f   : > { %v506_v31 = vmul.f32 0.6931472, %v1098_v23  ;;  %v714_v50 = vrot.slane %v713_v41, 2  ;;  %v748_v25 = vadd.f32 %v747_v40, %v746_v2 }
  0x90   : > { %v645_v24 = vrot.slane %v644_v18, 1  ;;  %v1100_v35 = vpop.eup %1099  ;;  %v732_v12 = vrot.slane %v731_v8, 2  ;;  %v621_v26 = vsub.f32 1.0, %v620_v14 }
  0x91   : > { %v571_v30 = vmul.f32 0.6931472, %v1100_v35  ;;  %v507_v43 = vadd.f32 %v506_v31, %v1464_v45  ;;  %v715_v54 = vadd.f32 %v714_v50, %v713_v41  ;;  %v749_v17 = vrot.slane %v748_v25, 1 }
  0x92   : > { %v646_v34 = vadd.f32 %v645_v24, %v644_v18  ;;  %v664_v18 = vadd.f32 %v663_v3, %v662_v57  ;;  %v733_v24 = vadd.f32 %v732_v12, %v731_v8  ;;  %v764_v50 = vmul.f32 0.25, %v1498_v16 }
  0x93   : > { %v572_v5 = vadd.f32 %v571_v30, %v1477_v53  ;;  %v539_v55 = vsub.f32 %v507_v43, %v522_v36  ;;  %v542_v59 = vsub.f32 %v507_v43, %v538_v46  ;;  %v716_v63 = vrot.slane %v715_v54, 1 }
  0x94   : > { %1101 = vlog2.f32 %v646_v34  ;;  %v734_v13 = vrot.slane %v733_v24, 1  ;;  %v750_v37 = vadd.f32 %v749_v17, %v748_v25 }
  0x95   : > { %v603_v45 = vsub.f32 %v572_v5, %v587_v48  ;;  %v717_v0 = vadd.f32 %v716_v63, %v715_v54  ;;  %v540_v53 = vmul.f32 %v539_v55, %v479_v29  ;;  %v543_v6 = vmul.f32 %v542_v59, %v480_v52 }
  0x96   : > { %v609_v39 = vsub.f32 %v572_v5, %v602_v61  ;;  %v735_v36 = vadd.f32 %v734_v13, %v733_v24 }
  0x97   : > { %v604_v11 = vmul.f32 %v603_v45, %v479_v29  ;;  %1103 = vlog2.f32 %v717_v0  ;;  %v544_v19 = vadd.f32 %v543_v6, %v540_v53 }
  0x98   : > { %v610_v21 = vmul.f32 %v609_v39, %v480_v52 }
  0x99   : > { %v606_v20 = vrot.slane %v604_v11, 1 }
  0x9a   : > { %v612_v31 = vrot.slane %v610_v21, 1 }
  0x9b   : > { %v608_v27 = vadd.f32 %v606_v20, %v544_v19 }
  0x9d   : > { %v614_v34 = vadd.f32 %v612_v31, %v608_v27 }
  0xa1   : > { %v1102_v60 = vpop.eup %1101 }
  0xa2   : > { %v648_v62 = vmul.f32 0.6931472, %v1102_v60 }
  0xa4   : > { %v649_v23 = vadd.f32 %v648_v62, %v1512_v28  ;;  %v1104_v35 = vpop.eup %1103 }
  0xa5   : > { %v719_v29 = vmul.f32 0.6931472, %v1104_v35 }
  0xa6   : > { %v681_v32 = vsub.f32 %v649_v23, %v664_v18  ;;  %v687_v33 = vsub.f32 %v649_v23, %v680_v7 }
  0xa7   : > { %v720_v41 = vadd.f32 %v719_v29, %v1540_v10 }
  0xa8   : > { %v682_v51 = vmul.f32 %v681_v32, %v620_v14  ;;  %v688_v15 = vmul.f32 %v687_v33, %v621_v26 }
  0xa9   : > { %v751_v42 = vsub.f32 %v720_v41, %v735_v36  ;;  %v757_v43 = vsub.f32 %v720_v41, %v750_v37 }
  0xaa   : > { %v684_v22 = vrot.slane %v682_v51, 2  ;;  %v690_v28 = vrot.slane %v688_v15, 2 }
  0xab   : > { %v752_v4 = vmul.f32 %v751_v42, %v620_v14  ;;  %v758_v47 = vmul.f32 %v757_v43, %v621_v26 }
  0xac   : > { %v686_v30 = vadd.f32 %v684_v22, %v614_v34 }
  0xad   : > { %v754_v5 = vrot.slane %v752_v4, 3  ;;  %v760_v48 = vrot.slane %v758_v47, 3 }
  0xae   : > { %v692_v46 = vadd.f32 %v690_v28, %v686_v30 }
  0xb0   : > { %v756_v49 = vadd.f32 %v754_v5, %v692_v46 }
  0xb2   : > { %v762_v52 = vadd.f32 %v760_v48, %v756_v49 }
  0xb4   : > { %v765_v54 = vmul.f32 %v764_v50, %v762_v52 }
  0xb6   : > { %v766_v38 = vsel %vm452_vm1, %v765_v54, 0.0 }
  0xb7   : > { %767 = vadd.xlane.f32.xlu0 %v766_v38 }
 0x105   : > { %v455_v10 = vpop.xlane.xlu0 %454 }
 0x106   : > { %v456_v44 = vrot.slane %v455_v10, 4 }
 0x108   : > { %v457_v55 = vadd.f32 %v456_v44, %v455_v10 }
 0x10a   : > { %v458_v56 = vrot.slane %v457_v55, 2 }
 0x10c   : > { %v459_v57 = vadd.f32 %v458_v56, %v457_v55 }
 0x10e   : > { %v460_v58 = vrot.slane %v459_v57, 1 }
 0x110   : > { %v461_v59 = vadd.f32 %v460_v58, %v459_v57 }
 0x112   : > { %987 = vpush %v461_v59 }
 0x140   : > { %v768_v16 = vpop.xlane.xlu0 %767 }
 0x141   : > { %v769_v61 = vrot.slane %v768_v16, 4 }
 0x143   : > { %s988_s9 = spop %987  ;;  %v770_v45 = vadd.f32 %v769_v61, %v768_v16 }
 0x144   : > { %s463_s28 = sadd.f32 %s988_s9, %s440_s20 }
 0x145   : > { %v771_v63 = vrot.slane %v770_v45, 2 }
 0x146   : > { %465 = sst [smem:[#allocation8]] %s463_s28 }
 0x147   : > { %1004 = dma.smem_to_hbm (%p1022_p10), %s1279_s21, 16, %s1621_s5, [#allocation4]   ;;  %v772_v0 = vadd.f32 %v771_v63, %v770_v45 }
 0x149   : > { %v773_v8 = vrot.slane %v772_v0, 1 }
 0x14b   : > { %v774_v2 = vadd.f32 %v773_v8, %v772_v0 }
 0x14d   : > { %993 = vpush %v774_v2 }
 0x17e   : > { %s994_s8 = spop %993 }
 0x17f   : > { %s776_s12 = sadd.f32 %s994_s8, %s763_s25 }
 0x181   : > { %778 = sst [smem:[#allocation9]] %s776_s12 }
 0x182   : > { %1006 = dma.smem_to_hbm (%p1022_p10), %s1280_s29, 16, %s1622_s6, [#allocation10]  }
 0x183   : > { %1242 = dma.done.wait (%p1022_p10), [#allocation4], 16  }
 0x184   : > { %1244 = vsyncadd (%p1022_p10), [#allocation4], 4294967280 }
 0x185   : > { %1246 = dma.done.wait (%p1022_p10), [#allocation10], 16  }
 0x186   : > { %1248 = vsyncadd (%p1022_p10), [#allocation10], 4294967280 }
 0x187   : > { %805 = sfence }
 0x188 PF: > { %s25_s26 = sadd.s32 1, %s1271_s26   ;;  %s1637_s19 = sld [smem:[#allocation17_spill]] }
 0x189   : > { %p22_p6 = scmp.ge.s32.totalorder %s25_s26, 4   ;;  %s1638_s24 = sld [smem:[#allocation15_spill]] }
 0x18a   : > { %s1639_s25 = sld [smem:[#allocation16_spill]]  ;;  %s1640_s21 = smov %s1255_s22 }
 0x18b   : > { %s1641_s22 = smov %s1259_s23  ;;  %24 = sbr.rel (!%p22_p6) target bundleno = 11 (0xb), region = 126 }
 0x18e   : > { %s1642_s23 = smov %s1637_s19 }
 0x190   :  { %811 = vsyncpa [#allocation3], 1 }
 0x191   :  { %813 = vsyncpa [#allocation3 + $0x1], 1 }
 0x192   :  { %814 = vsyncpa [#allocation6], 1 }
 0x193   :  { %816 = vsyncpa [#allocation6 + $0x1], 1 }
 0x194   :  { %817 = vsyncpa [#allocation4], 1 }
 0x195   :  { %819 = vsyncpa [#allocation4 + $0x1], 1 }
 0x196   :  { %820 = vsyncpa [#allocation10], 1 }

</bundles_post_ra>
